<compile_context>
chip_gen: v7x
topology: tpu7x:2x2x1
jax: 0.10.0
libtpu: 0.0.40
codegen_flags: <defaults>
</compile_context>

<pallas_src>
import functools

import jax
import jax.numpy as jnp
from jax.experimental import pallas as pl
from jax.experimental.pallas import tpu as pltpu


def _round_up(x, m):
    return ((x + m - 1) // m) * m


def _cdiv(a, b):
    return -(-a // b)


def critic_kernel(sa_ref, w1_ref, b1_ref, w2_ref, b2_ref,
                  w3a_ref, w3b_ref, b3_ref, out_ref):
    # ---- fused layer 1 (both heads along N), single MXU matmul ----
    h = (jnp.dot(sa_ref[...], w1_ref[...], preferred_element_type=jnp.float32)
         + b1_ref[...])
    h = jnp.maximum(h, 0.0).astype(jnp.bfloat16)
    # TODO(synk): drop_layer1 / drop_layer3 are eval-mode identities here.

    # ---- fused layer 2 (block-diagonal W2 (+) W5), single MXU matmul ----
    g = jnp.dot(h, w2_ref[...], preferred_element_type=jnp.float32) + b2_ref[...]
    g = jnp.maximum(g, 0.0)  # keep f32: layer 3 runs on the VPU/XLU
    # TODO(synk): drop_layer2 / drop_layer4 are eval-mode identities here.

    # ---- layer 3 on the VPU: only 2 output columns are live ----
    # w3a is [w3 | 0], w3b is [0 | w6]; the zero halves mask the wrong head.
    q1 = jnp.sum(g * w3a_ref[...], axis=-1, keepdims=True)   # (tb, 1)
    q2 = jnp.sum(g * w3b_ref[...], axis=-1, keepdims=True)   # (tb, 1)
    q = jnp.concatenate([q1, q2], axis=-1) + b3_ref[...]     # (tb, 2)
    out_ref[...] = q.astype(out_ref.dtype)


def pack_critic_params(params, state_dim, action_dim):
    """One-time packing of the twin-head weights into fused kernel operands."""
    d = state_dim + action_dim
    h1, h2 = 2 * d, 4 * d

    w1, b1 = params["l1"]; w2, b2 = params["l2"]; w3, b3 = params["l3"]
    w4, b4 = params["l4"]; w5, b5 = params["l5"]; w6, b6 = params["l6"]

    # layer 1: [W1 | W4]  -> (d, 2*h1), bf16 operand
    w1f = jnp.concatenate([w1, w4], axis=1).astype(jnp.bfloat16)
    b1f = jnp.concatenate([b1, b4]).reshape(1, 2 * h1).astype(jnp.float32)

    # layer 2: blockdiag(W2, W5) -> (2*h1, 2*h2), bf16 operand
    w2f = jnp.zeros((2 * h1, 2 * h2), jnp.float32)
    w2f = w2f.at[:h1, :h2].set(w2).at[h1:, h2:].set(w5).astype(jnp.bfloat16)
    b2f = jnp.concatenate([b2, b5]).reshape(1, 2 * h2).astype(jnp.float32)

    # layer 3: two f32 rows for the VPU (zero-padded to mask the other head)
    w3a = jnp.zeros((1, 2 * h2), jnp.float32).at[0, :h2].set(w3[:, 0])
    w3b = jnp.zeros((1, 2 * h2), jnp.float32).at[0, h2:].set(w6[:, 0])
    b3f = jnp.stack([b3[0], b6[0]]).reshape(1, 2).astype(jnp.float32)

    return {"w1": w1f, "b1": b1f, "w2": w2f, "b2": b2f,
            "w3a": w3a, "w3b": w3b, "b3": b3f,
            "dims": (state_dim, action_dim)}


@functools.partial(jax.jit, static_argnames=("tile_b",))
def critic_forward(state, action, packed, *, tile_b=1024):
    """Pallas-accelerated Critic.forward. Returns (q1, q2), each (B, 1) f32."""
    B, state_dim = state.shape
    action_dim = action.shape[1]
    d = state_dim + action_dim
    h1 = 2 * d
    h2 = 4 * d

    # --- batch tile: multiple of 8, <= tile_b, and >=2 grid tiles when B > 8
    #     so both of v7x's TensorCores get work. Weights stay resident. ---
    if B > 8:
        tb = min(tile_b, _round_up(_cdiv(B, 2), 8))
    else:
        tb = min(tile_b, _round_up(B, 8))
    tb = _round_up(tb, 8)
    Bp = _round_up(B, tb)

    sa = jnp.concatenate([state, action], axis=1).astype(jnp.bfloat16)
    if Bp != B:
        sa = jnp.pad(sa, ((0, Bp - B), (0, 0)))

    grid = (Bp // tb,)

    const = lambda r, c: pl.BlockSpec((r, c), lambda i: (0, 0))
    in_specs = [
        pl.BlockSpec((tb, d), lambda i: (i, 0)),   # sa tile
        const(d, 2 * h1),                          # w1 fused (bf16)
        const(1, 2 * h1),                          # b1
        const(2 * h1, 2 * h2),                     # w2 blockdiag (bf16)
        const(1, 2 * h2),                          # b2
        const(1, 2 * h2),                          # w3 row (head 1)
        const(1, 2 * h2),                          # w6 row (head 2)
        const(1, 2),                               # b3 fused
    ]
    out_spec = pl.BlockSpec((tb, 2), lambda i: (i, 0))

    flops = (2 * Bp * (d * 2 * h1 + 2 * h1 * 2 * h2)   # MXU layers
             + 4 * Bp * 2 * h2)                        # VPU layer 3 (mul + add)
    bytes_accessed = (
        Bp * d * 2                                     # sa (bf16)
        + (d * 2 * h1 + 2 * h1 * 2 * h2) * 2           # matmul weights (bf16)
        + (2 * h1 + 2 * h2 + 2 * 2 * h2 + 2) * 4       # biases + layer-3 rows (f32)
        + Bp * 2 * 4                                   # output (f32)
    )

    out = pl.pallas_call(
        critic_kernel,
        out_shape=jax.ShapeDtypeStruct((Bp, 2), jnp.float32),
        grid=grid,
        in_specs=in_specs,
        out_specs=out_spec,
        compiler_params=pltpu.CompilerParams(
            dimension_semantics=("parallel",)),
        cost_estimate=pl.CostEstimate(
            flops=int(flops), transcendentals=0,
            bytes_accessed=int(bytes_accessed)),
    )(sa, packed["w1"], packed["b1"], packed["w2"], packed["b2"],
      packed["w3a"], packed["w3b"], packed["b3"])

    q1 = out[:B, 0:1]
    q2 = out[:B, 1:2]
    return q1, q2


def init_params(key, state_dim, action_dim):
    """Deterministic PyTorch-style (uniform +-1/sqrt(fan_in)) init."""
    d = state_dim + action_dim
    layer_dims = {
        "l1": (d, 2 * d), "l2": (2 * d, 4 * d), "l3": (4 * d, 1),
        "l4": (d, 2 * d), "l5": (2 * d, 4 * d), "l6": (4 * d, 1),
    }
    params = {}
    for name, (fan_in, fan_out) in layer_dims.items():
        key, kw, kb = jax.random.split(key, 3)
        bound = 1.0 / jnp.sqrt(fan_in)
        # Stored as (in, out) so the kernel computes x @ W + b (== x @ W_torch.T + b).
        w = jax.random.uniform(kw, (fan_in, fan_out), jnp.float32, -bound, bound)
        b = jax.random.uniform(kb, (fan_out,), jnp.float32, -bound, bound)
        params[name] = (w, b)
    return params


def critic_reference_kernel_recipe(state, action, params):
    """Pure-JAX reference mirroring the kernel's numerics:
    layers 1-2 with bf16 operands / f32 accumulation, layer 3 in full f32."""
    sa = jnp.concatenate([state, action], axis=1).astype(jnp.bfloat16)

    def head(x, names):
        w, b = params[names[0]]
        x = jnp.maximum(jnp.dot(x, w.astype(jnp.bfloat16),
                                preferred_element_type=jnp.float32) + b, 0.0)
        x = x.astype(jnp.bfloat16)
        w, b = params[names[1]]
        x = jnp.maximum(jnp.dot(x, w.astype(jnp.bfloat16),
                                preferred_element_type=jnp.float32) + b, 0.0)
        w, b = params[names[2]]
        return jnp.dot(x, w) + b  # f32, matches in-kernel VPU layer 3

    return head(sa, ("l1", "l2", "l3")), head(sa, ("l4", "l5", "l6"))


def critic_reference_f32(state, action, params):
    """Full-precision reference (matches the original PyTorch math)."""
    sa = jnp.concatenate([state, action], axis=1)

    def head(x, names):
        w, b = params[names[0]]
        x = jnp.maximum(x @ w + b, 0.0)
        w, b = params[names[1]]
        x = jnp.maximum(x @ w + b, 0.0)
        w, b = params[names[2]]
        return x @ w + b

    return head(sa, ("l1", "l2", "l3")), head(sa, ("l4", "l5", "l6"))


if __name__ == "__main__":
    state_dim, action_dim, batch = 24, 8, 8

    key = jax.random.PRNGKey(0)
    kp, ks, ka = jax.random.split(key, 3)
    params = init_params(kp, state_dim, action_dim)
    state = jax.random.normal(ks, (batch, state_dim), jnp.float32)
    action = jax.random.normal(ka, (batch, action_dim), jnp.float32)

    # One-time weight packing (hoisted out of the per-call path).
    packed = pack_critic_params(params, state_dim, action_dim)
    packed = jax.block_until_ready(packed)

    q1, q2 = critic_forward(state, action, packed)
    q1, q2 = jax.block_until_ready((q1, q2))

    assert q1.shape == (batch, 1) and q2.shape == (batch, 1)

    # Tight check vs. a reference using the identical numeric recipe.
    q1_bf, q2_bf = critic_reference_kernel_recipe(state, action, params)
    assert jnp.allclose(q1, q1_bf, atol=2e-3, rtol=2e-3)
    assert jnp.allclose(q2, q2_bf, atol=2e-3, rtol=2e-3)

    # Loose check vs. full-f32 reference (bf16 operand quantization only).
    q1_f32, q2_f32 = critic_reference_f32(state, action, params)
    assert jnp.allclose(q1, q1_f32, atol=5e-2, rtol=5e-2)
    assert jnp.allclose(q2, q2_f32, atol=5e-2, rtol=5e-2)

    print("KERNEL_OK")
</pallas_src>

<mosaic_0001>
module attributes {stable_mosaic.version = 11 : i64} {
  func.func @critic_kernel(%arg0: i32, %arg1: memref<8x32xbf16, #tpu.memory_space<vmem>>, %arg2: memref<32x128xbf16, #tpu.memory_space<vmem>>, %arg3: memref<1x128xf32, #tpu.memory_space<vmem>>, %arg4: memref<128x256xbf16, #tpu.memory_space<vmem>>, %arg5: memref<1x256xf32, #tpu.memory_space<vmem>>, %arg6: memref<1x256xf32, #tpu.memory_space<vmem>>, %arg7: memref<1x256xf32, #tpu.memory_space<vmem>>, %arg8: memref<1x2xf32, #tpu.memory_space<vmem>>, %arg9: memref<8x2xf32, #tpu.memory_space<vmem>>) attributes {dimension_semantics = [#tpu.dimension_semantics<parallel>], iteration_bounds = array<i64: 1>, scalar_prefetch = 0 : i64, scratch_operands = 0 : i64, tpu.core_type = #tpu.core_type<tc>, window_params = [{transform_indices = @transform_0, window_bounds = array<i64: 8, 32>}, {pipeline_mode = #tpu.pipeline_mode<synchronous>, transform_indices = @transform_1, window_bounds = array<i64: 32, 128>}, {pipeline_mode = #tpu.pipeline_mode<synchronous>, transform_indices = @transform_2, window_bounds = array<i64: 1, 128>}, {pipeline_mode = #tpu.pipeline_mode<synchronous>, transform_indices = @transform_3, window_bounds = array<i64: 128, 256>}, {pipeline_mode = #tpu.pipeline_mode<synchronous>, transform_indices = @transform_4, window_bounds = array<i64: 1, 256>}, {pipeline_mode = #tpu.pipeline_mode<synchronous>, transform_indices = @transform_5, window_bounds = array<i64: 1, 256>}, {pipeline_mode = #tpu.pipeline_mode<synchronous>, transform_indices = @transform_6, window_bounds = array<i64: 1, 256>}, {pipeline_mode = #tpu.pipeline_mode<synchronous>, transform_indices = @transform_7, window_bounds = array<i64: 1, 2>}, {transform_indices = @transform_8, window_bounds = array<i64: 8, 2>}]} {
    %c0 = arith.constant 0 : index
    %c0_0 = arith.constant 0 : index
    %0 = vector.load %arg1[%c0, %c0_0] : memref<8x32xbf16, #tpu.memory_space<vmem>>, vector<8x32xbf16>
    %c0_1 = arith.constant 0 : index
    %c0_2 = arith.constant 0 : index
    %1 = vector.load %arg2[%c0_1, %c0_2] : memref<32x128xbf16, #tpu.memory_space<vmem>>, vector<32x128xbf16>
    %cst = arith.constant dense<0.000000e+00> : vector<8x128xf32>
    %2 = tpu.matmul %0, %1, %cst {dimension_numbers = #tpu.dot_dimension_numbers<[1], [0], [0], [1], [0, 0, 1, 1], [], []>} : vector<8x32xbf16>, vector<32x128xbf16>, vector<8x128xf32> -> vector<8x128xf32>
    %c0_3 = arith.constant 0 : index
    %c0_4 = arith.constant 0 : index
    %3 = vector.load %arg3[%c0_3, %c0_4] : memref<1x128xf32, #tpu.memory_space<vmem>>, vector<1x128xf32>
    %4 = vector.broadcast %3 : vector<1x128xf32> to vector<8x128xf32>
    %5 = arith.addf %2, %4 : vector<8x128xf32>
    %cst_5 = arith.constant 0.000000e+00 : f32
    %6 = vector.broadcast %cst_5 : f32 to vector<8x128xf32>
    %7 = arith.maximumf %5, %6 : vector<8x128xf32>
    %8 = arith.truncf %7 : vector<8x128xf32> to vector<8x128xbf16>
    %c0_6 = arith.constant 0 : index
    %c0_7 = arith.constant 0 : index
    %9 = vector.load %arg4[%c0_6, %c0_7] : memref<128x256xbf16, #tpu.memory_space<vmem>>, vector<128x256xbf16>
    %cst_8 = arith.constant dense<0.000000e+00> : vector<8x256xf32>
    %10 = tpu.matmul %8, %9, %cst_8 {dimension_numbers = #tpu.dot_dimension_numbers<[1], [0], [0], [1], [0, 0, 1, 1], [], []>} : vector<8x128xbf16>, vector<128x256xbf16>, vector<8x256xf32> -> vector<8x256xf32>
    %c0_9 = arith.constant 0 : index
    %c0_10 = arith.constant 0 : index
    %11 = vector.load %arg5[%c0_9, %c0_10] : memref<1x256xf32, #tpu.memory_space<vmem>>, vector<1x256xf32>
    %12 = vector.broadcast %11 : vector<1x256xf32> to vector<8x256xf32>
    %13 = arith.addf %10, %12 : vector<8x256xf32>
    %cst_11 = arith.constant 0.000000e+00 : f32
    %14 = vector.broadcast %cst_11 : f32 to vector<8x256xf32>
    %15 = arith.maximumf %13, %14 : vector<8x256xf32>
    %c0_12 = arith.constant 0 : index
    %c0_13 = arith.constant 0 : index
    %16 = vector.load %arg6[%c0_12, %c0_13] : memref<1x256xf32, #tpu.memory_space<vmem>>, vector<1x256xf32>
    %17 = vector.broadcast %16 : vector<1x256xf32> to vector<8x256xf32>
    %18 = arith.mulf %15, %17 : vector<8x256xf32>
    %cst_14 = arith.constant dense<0.000000e+00> : vector<8xf32>
    %19 = vector.multi_reduction <add>, %18, %cst_14 [1] : vector<8x256xf32> to vector<8xf32>
    %20 = vector.shape_cast %19 : vector<8xf32> to vector<8x1xf32>
    %c0_15 = arith.constant 0 : index
    %c0_16 = arith.constant 0 : index
    %21 = vector.load %arg7[%c0_15, %c0_16] : memref<1x256xf32, #tpu.memory_space<vmem>>, vector<1x256xf32>
    %22 = vector.broadcast %21 : vector<1x256xf32> to vector<8x256xf32>
    %23 = arith.mulf %15, %22 : vector<8x256xf32>
    %cst_17 = arith.constant dense<0.000000e+00> : vector<8xf32>
    %24 = vector.multi_reduction <add>, %23, %cst_17 [1] : vector<8x256xf32> to vector<8xf32>
    %25 = vector.shape_cast %24 : vector<8xf32> to vector<8x1xf32>
    %26 = tpu.concatenate %20, %25 in 1 : vector<8x1xf32>, vector<8x1xf32> -> vector<8x2xf32>
    %c0_18 = arith.constant 0 : index
    %c0_19 = arith.constant 0 : index
    %27 = vector.load %arg8[%c0_18, %c0_19] : memref<1x2xf32, #tpu.memory_space<vmem>>, vector<1x2xf32>
    %28 = vector.broadcast %27 : vector<1x2xf32> to vector<8x2xf32>
    %29 = arith.addf %26, %28 : vector<8x2xf32>
    %c0_20 = arith.constant 0 : index
    %c0_21 = arith.constant 0 : index
    %30 = vector.load %arg9[%c0_20, %c0_21] : memref<8x2xf32, #tpu.memory_space<vmem>>, vector<8x2xf32>
    tpu.vector_store %arg9[%c0_20, %c0_21], %29 {strides = array<i32>} : memref<8x2xf32, #tpu.memory_space<vmem>>, vector<8x2xf32>,
    return
  }
  func.func @transform_0(%arg0: i32) -> (i32, i32) {
    %c0_i32 = arith.constant 0 : i32
    %c0_i32_0 = arith.constant 0 : i32
    return %arg0, %c0_i32 : i32, i32
  }
  func.func @transform_1(%arg0: i32) -> (i32, i32) {
    %c0_i32 = arith.constant 0 : i32
    %c0_i32_0 = arith.constant 0 : i32
    %c0_i32_1 = arith.constant 0 : i32
    return %c0_i32, %c0_i32_0 : i32, i32
  }
  func.func @transform_2(%arg0: i32) -> (i32, i32) {
    %c0_i32 = arith.constant 0 : i32
    %c0_i32_0 = arith.constant 0 : i32
    %c0_i32_1 = arith.constant 0 : i32
    return %c0_i32, %c0_i32_0 : i32, i32
  }
  func.func @transform_3(%arg0: i32) -> (i32, i32) {
    %c0_i32 = arith.constant 0 : i32
    %c0_i32_0 = arith.constant 0 : i32
    %c0_i32_1 = arith.constant 0 : i32
    return %c0_i32, %c0_i32_0 : i32, i32
  }
  func.func @transform_4(%arg0: i32) -> (i32, i32) {
    %c0_i32 = arith.constant 0 : i32
    %c0_i32_0 = arith.constant 0 : i32
    %c0_i32_1 = arith.constant 0 : i32
    return %c0_i32, %c0_i32_0 : i32, i32
  }
  func.func @transform_5(%arg0: i32) -> (i32, i32) {
    %c0_i32 = arith.constant 0 : i32
    %c0_i32_0 = arith.constant 0 : i32
    %c0_i32_1 = arith.constant 0 : i32
    return %c0_i32, %c0_i32_0 : i32, i32
  }
  func.func @transform_6(%arg0: i32) -> (i32, i32) {
    %c0_i32 = arith.constant 0 : i32
    %c0_i32_0 = arith.constant 0 : i32
    %c0_i32_1 = arith.constant 0 : i32
    return %c0_i32, %c0_i32_0 : i32, i32
  }
  func.func @transform_7(%arg0: i32) -> (i32, i32) {
    %c0_i32 = arith.constant 0 : i32
    %c0_i32_0 = arith.constant 0 : i32
    %c0_i32_1 = arith.constant 0 : i32
    return %c0_i32, %c0_i32_0 : i32, i32
  }
  func.func @transform_8(%arg0: i32) -> (i32, i32) {
    %c0_i32 = arith.constant 0 : i32
    %c0_i32_0 = arith.constant 0 : i32
    return %arg0, %c0_i32 : i32, i32
  }
}

</mosaic_0001>

<bundles_post_ra>
// kernel: critic_forward.1
= control target key start
LH: loop header
LB: loop body
LE: loop exit
PB: predicated region body
PF: predicated region fallthrough
CT: control target
= control target key end

     0   :  { %13 = vsyncpa [#allocation3], 0  ;;  %s404_s27 = smov [#allocation2]   ;;  %s494_s0 = inlined_call_operand.vmem [shape: bf16[8,32], index: 0, kind: input, shape index: {}]   ;;  %s495_s1 = inlined_call_operand.vmem [shape: bf16[32,128], index: 1, kind: input, shape index: {}]   ;;  %s496_s2 = inlined_call_operand.vmem [shape: f32[1,128], index: 2, kind: input, shape index: {}]   ;;  %s497_s3 = inlined_call_operand.hbm [shape: bf16[128,256], index: 3, kind: input, shape index: {}]   ;;  %s498_s4 = inlined_call_operand.vmem [shape: f32[1,256], index: 4, kind: input, shape index: {}]   ;;  %s499_s5 = inlined_call_operand.vmem [shape: f32[1,256], index: 5, kind: input, shape index: {}]   ;;  %s500_s6 = inlined_call_operand.vmem [shape: f32[1,256], index: 6, kind: input, shape index: {}]   ;;  %s501_s7 = inlined_call_operand.vmem [shape: f32[1,2], index: 7, kind: input, shape index: {}]   ;;  %s502_s8 = inlined_call_operand.vmem [shape: f32[8,2], index: 8, kind: output, shape index: {}]  }
   0x1   :  { %s25_s28 = sshll.u32 %s404_s27, 4  ;;  %s380_s9 = scalar_lea.hbm %s497_s3, 2048  ;;  %s26_s28 = int_to_ptr.vmem [resolvable:$true] %s25_s28 }
   0x2   :  { %p381_p0 = scmp.ne.s32.totalorder %s497_s3, %s380_s9  ;;  %p384_p1 = scmp.lt.u32.totalorder %s380_s9, %s497_s3 }
   0x4   :  { %p386_p2 = pnand %p384_p1, %p381_p0 }
   0x6   :  { %389 = shalt.err (!%p386_p2)
}
   0x7   :  { %s390_s14 = scalar_lea.vmem %s26_s28, 2048  ;;  %p395_p4 = scmp.lt.s32.totalorder %s26_s28, %s26_s28 }
   0x8   :  { %p391_p3 = scmp.ne.s32.totalorder %s26_s28, %s390_s14  ;;  %p396_p5 = scmp.lt.s32.totalorder %s390_s14, %s390_s14 }
   0xa   :  { %p397_p6 = por %p396_p5, %p395_p4 }
   0xc   :  { %p398_p7 = pnand %p397_p6, %p391_p3 }
   0xe   :  { %401 = shalt.err (!%p398_p7)
}
   0xf   :  { %s405_s15 = smov 128   ;;  %s406_s16 = smov 8  }
  0x10   :  { %31 = dma.hbm_to_vmem [thread:$0]  %s497_s3, 2048, %s26_s28, [#allocation3], %s405_s15, %s405_s15, %s406_s16  }
  0x11   :  { %402 = dma.done.wait [#allocation3], 2048  }
  0x12   :  { %403 = vsyncadd [#allocation3], 4294965248  ;;  %v407_v0 = vmov 0.0   ;;  %vm408_vm0 = vmmov 0   ;;  %v354_v1 = vld [vmem:[%s495_s1] sm:$0xff]   ;;  %v355_v2 = vld [vmem:[%s495_s1 + $0x8] sm:$0xff]   ;;  %v132_v29 = vlaneseq }
  0x13   :  { %340 = vmatprep.subr.bf16.mxu0 %v407_v0  ;;  %344 = vmatprep.mubr.msk.bf16.mxu0 %vm408_vm0, %v407_v0  ;;  %v356_v3 = vld [vmem:[#allocation2 + $0x4] ss:$8 sps:$4 sm:$0xff]   ;;  %v358_v4 = vld [vmem:[#allocation2] ss:$8 sps:$4 sm:$0xff]   ;;  %v359_v5 = vld [vmem:[#allocation2 + $0x14] ss:$8 sps:$4 sm:$0xff]  }
  0x14   :  { %341 = vmatpush3.bf16.msra.mxu0 %v354_v1  ;;  %v44_v6 = vld [vmem:[%s494_s0] sm:$0xf]  ;;  %222 = vmatprep.subr.bf16.mxu1 %v356_v3  ;;  %vm68_vm1 = vcmask 261120   ;;  %v361_v7 = vld [vmem:[#allocation2 + $0x10] ss:$8 sps:$4 sm:$0xff]   ;;  %v409_v20 = vmov 0  }
  0x15   :  { %342 = vmatprep.subr.bf16.mxu0 %v407_v0  ;;  %223 = vmatpush1.bf16.msra.mxu1 %v358_v4  ;;  %v362_v8 = vld [vmem:[#allocation2 + $0x24] ss:$8 sps:$4 sm:$0xff]   ;;  %v364_v9 = vld [vmem:[#allocation2 + $0x20] ss:$8 sps:$4 sm:$0xff]   ;;  %v365_v10 = vld [vmem:[#allocation2 + $0x34] ss:$8 sps:$4 sm:$0xff]  }
  0x16   :  { %224 = vmatprep.subr.bf16.mxu1 %v359_v5  ;;  %v367_v11 = vld [vmem:[#allocation2 + $0x30] ss:$8 sps:$4 sm:$0xff]   ;;  %v368_v12 = vld [vmem:[#allocation2 + $0x44] ss:$8 sps:$4 sm:$0xff]   ;;  %v370_v13 = vld [vmem:[#allocation2 + $0x40] ss:$8 sps:$4 sm:$0xff]   ;;  %254 = vmatprep.mubr.bf16.mxu1 %v409_v20 }
  0x17   :  { %v371_v14 = vld [vmem:[#allocation2 + $0x54] ss:$8 sps:$4 sm:$0xff]   ;;  %v373_v15 = vld [vmem:[#allocation2 + $0x50] ss:$8 sps:$4 sm:$0xff]   ;;  %v374_v16 = vld [vmem:[#allocation2 + $0x64] ss:$8 sps:$4 sm:$0xff]  }
  0x18   :  { %343 = vmatpush3.bf16.msra.mxu0 %v355_v2  ;;  %v376_v17 = vld [vmem:[#allocation2 + $0x60] ss:$8 sps:$4 sm:$0xff]   ;;  %v377_v18 = vld [vmem:[#allocation2 + $0x74] ss:$8 sps:$4 sm:$0xff]   ;;  %v379_v19 = vld [vmem:[#allocation2 + $0x70] ss:$8 sps:$4 sm:$0xff]  }
  0x19   :  { %225 = vmatpush1.bf16.msra.mxu1 %v361_v7  ;;  %v316_v21 = vld [vmem:[%s496_s2] ss:$0 sm:$0xff]  ;;  %v133_v30 = vshrl.u32 %v132_v29, 7  ;;  %vm299_vm2 = vcmask 7168   ;;  %vm309_vm3 = vcmask 15360  }
  0x1a   :  { %226 = vmatprep.subr.bf16.mxu1 %v362_v8  ;;  %v130_v32 = vld [vmem:[%s498_s4] sm:$0x3] }
  0x1b   :  { %345 = vmatmul.mubr.msk.bf16.vlgmr.msra.gmra.mrb[0].mxu0 %vm68_vm1, %v44_v6  ;;  %v134_v31 = vsub.s32 0, %v133_v30  ;;  %v138_v33 = vsub.s32 1, %v133_v30  ;;  %v282_v35 = vld [vmem:[%s500_s6] sm:$0x3] }
  0x1c   :  { %v265_v37 = vld [vmem:[%s499_s5] sm:$0x3] }
  0x1d   :  { %227 = vmatpush1.bf16.msra.mxu1 %v364_v9  ;;  %v135_v34 = vrot.slane %v130_v32, %v134_v31  ;;  %v139_v36 = vrot.slane %v130_v32, %v138_v33  ;;  %v287_v40 = vrot.slane %v282_v35, %v134_v31  ;;  %v270_v42 = vrot.slane %v265_v37, %v134_v31  ;;  %v336_v57 = vld [vmem:[%s501_s7] ss:$0 sm:$0xff] }
  0x1e   :  { %228 = vmatprep.subr.bf16.mxu1 %v365_v10  ;;  %v291_v44 = vrot.slane %v282_v35, %v138_v33  ;;  %v274_v46 = vrot.slane %v265_v37, %v138_v33 }
  0x21   :  { %229 = vmatpush1.bf16.msra.mxu1 %v367_v11 }
  0x22   :  { %230 = vmatprep.subr.bf16.mxu1 %v368_v12 }
  0x25   :  { %231 = vmatpush1.bf16.msra.mxu1 %v370_v13 }
  0x26   :  { %232 = vmatprep.subr.bf16.mxu1 %v371_v14 }
  0x29   :  { %233 = vmatpush1.bf16.msra.mxu1 %v373_v15 }
  0x2a   :  { %234 = vmatprep.subr.bf16.mxu1 %v374_v16 }
  0x2d   :  { %235 = vmatpush1.bf16.msra.mxu1 %v376_v17 }
  0x2e   :  { %236 = vmatprep.subr.bf16.mxu1 %v377_v18 }
  0x31   :  { %237 = vmatpush1.bf16.msra.mxu1 %v379_v19 }
  0xee   :  { %v106_v22 = vpop.f32.mrb[0].mxu0 }
  0xef   :  { %v107_v23 = vadd.f32 %v316_v21, %v106_v22  ;;  %v346_v24 = vpop.f32.mrb[1].mxu0 }
  0xf0   :  { %v109_v25 = vpop.f32.mrb[2].mxu0 }
  0xf1   :  { %v112_v26 = vmax.f32 %v107_v23, 0.0  ;;  %v347_v27 = vpop.f32.mrb[3].mxu0 }
  0xf3   :  { %v113_v28 = vpack.c.bf16 %v112_v26, %v112_v26 }
  0xf5   :  { %255 = vmatmul.mubr.bf16.vlgmr.msra.gmra.mrb[0].mxu1 %v113_v28 }
 0x1c8   :  { %v256_v38 = vpop.f32.mrb[0].mxu1 }
 0x1c9   :  { %v257_v39 = vadd.f32 %v256_v38, %v135_v34  ;;  %v258_v41 = vpop.f32.mrb[1].mxu1 }
 0x1ca   :  { %v259_v43 = vadd.f32 %v258_v41, %v139_v36  ;;  %v260_v45 = vpop.f32.mrb[2].mxu1 }
 0x1cb   :  { %v263_v47 = vmax.f32 %v257_v39, 0.0  ;;  %v261_v48 = vpop.f32.mrb[3].mxu1 }
 0x1cc   :  { %v264_v49 = vmax.f32 %v259_v43, 0.0 }
 0x1cd   :  { %v294_v50 = vmul.f32 %v287_v40, %v263_v47  ;;  %v277_v51 = vmul.f32 %v270_v42, %v263_v47 }
 0x1ce   :  { %v295_v52 = vmul.f32 %v291_v44, %v264_v49  ;;  %v278_v53 = vmul.f32 %v274_v46, %v264_v49 }
 0x1d0   :  { %v279_v54 = vadd.f32 %v278_v53, %v277_v51  ;;  %v296_v55 = vadd.f32 %v295_v52, %v294_v50 }
 0x1d2   :  { %280 = vadd.xlane.f32.xlu0 %v279_v54 }
 0x1d6   :  { %297 = vadd.xlane.f32.xlu0 %v296_v55 }
 0x25f   :  { %v281_v56 = vpop.xlane.xlu0 %280 }
 0x263   :  { %v298_v58 = vpop.xlane.xlu0 %297 }
 0x264   :  { %v300_v59 = vsel %vm299_vm2, %v281_v56, %v298_v58 }
 0x265   :  { %v308_v60 = vadd.f32 %v336_v57, %v300_v59 }
 0x267   :  { %310 = vst.msk [vmem:[%s502_s8] sm:$0xff] %vm309_vm3, %v308_v60 }
 0x268   :  { %315 = vsyncpa [#allocation3], 1 }

</bundles_post_ra>
